<compile_context>
chip_gen: v6e
topology: v6e:2x2x1
jax: 0.10.0
libtpu: 0.0.40
codegen_flags: <defaults>
</compile_context>

<pallas_src>
import functools

import jax
import jax.numpy as jnp
from jax import lax
from jax.experimental import pallas as pl
from jax.experimental.pallas import tpu as pltpu


def _tem_embedding_kernel(k, Cpad, te_ref, w1_ref, b1_ref, w2_ref, b2_ref,
                          out_ref):
    """Windowed grouped one-hot construction + 2-layer MLP, all in VMEM.

    te_ref : [TRk, 2k] int32  precomputed compare targets:
               cols [0,k)  = dow % 7            of the k rows in the group
               cols [k,2k) = 7 + (tod % T)      of the k rows in the group
    w1_ref : [k*Cpad, k*D] float32  block-diagonal Linear1 weight, each
               group's C..Cpad rows zero-padded ([in, out] layout)
    b1_ref : [1, k*D]      float32  tiled bias
    w2_ref : [k*D, k*D]    float32  block-diagonal Linear2 weight
    b2_ref : [1, k*D]      float32  tiled bias
    out_ref: [TRk, k*D]    float32  lane-dense output (row-major == [TRk*k, D])
    """
    TRk = te_ref.shape[0]

    # Single lane-aligned [TRk, Cpad] iota shared by every group (Cpad is a
    # multiple of 128, so every group slice is 128-lane aligned).
    idx = lax.broadcasted_iota(jnp.int32, (TRk, Cpad), 1)

    cols = []
    for j in range(k):
        dow_t = te_ref[:, j:j + 1]           # [TRk, 1] ready target in [0, 7)
        tod_t = te_ref[:, k + j:k + j + 1]   # [TRk, 1] ready target in [7, C)
        hit = jnp.logical_or(idx == dow_t, idx == tod_t)
        # Fused compare->select straight to f32 (no separate bool pass).
        cols.append(jnp.where(hit, 1.0, 0.0).astype(jnp.float32))
    onehot = cols[0] if k == 1 else jnp.concatenate(cols, axis=1)  # [TRk, k*Cpad]

    # FeedForward([295, D, D]) with ReLU between layers (no res/LN), applied
    # per-group via block-diagonal weights -> lane-dense [TRk, k*D] output.
    h = jnp.dot(onehot, w1_ref[...], preferred_element_type=jnp.float32) + b1_ref[...]
    h = jnp.maximum(h, 0.0)
    out = jnp.dot(h, w2_ref[...], preferred_element_type=jnp.float32) + b2_ref[...]
    out_ref[...] = out


def tem_embedding(TE, params, T=288, tile_rows=2048):
    """TE: [B, S, 2] int array -> [B, S, 1, D] float32 (matches PyTorch)."""
    B, S, _ = TE.shape
    D = params["w1"].shape[1]
    C = 7 + T
    Cpad = ((C + 127) // 128) * 128          # per-group lane-aligned width
    R = B * S

    # Lane-packing factor: pack k rows into one lane-dense output row.
    k = 128 // D if (D < 128 and 128 % D == 0) else 1
    row_align = 8 * k

    # Row-tile size (in original rows): big enough to amortize the ~0.35 us
    # per-step overhead, capped so per-step VMEM stays well under the v7x
    # 64 MiB/TC budget, and clamped so the grid has >= 2 steps when R allows
    # (both TensorCores busy, DMA/compute overlap preserved).
    TR_CAP = 4096
    TR = min(tile_rows, TR_CAP)
    TR = min(TR, R) if R >= row_align else row_align
    if R >= 2 * row_align:
        TR = min(TR, -(-R // 2))             # ceil(R / 2)
    TR = max(row_align, ((TR + row_align - 1) // row_align) * row_align)
    Rp = ((R + TR - 1) // TR) * TR
    TRk = TR // k
    Rk = Rp // k

    te = TE.reshape(R, 2).astype(jnp.int32)
    # Hoisted PyTorch-style modulo + column offset: ready compare targets.
    # (jnp integer % follows the divisor's sign, same as torch.remainder.)
    dow_t = te[:, 0] % 7
    tod_t = 7 + (te[:, 1] % T)
    if Rp != R:
        dow_t = jnp.pad(dow_t, (0, Rp - R))  # padded rows -> discarded later
        tod_t = jnp.pad(tod_t, (0, Rp - R))
    te_g = jnp.concatenate([dow_t.reshape(Rk, k), tod_t.reshape(Rk, k)],
                           axis=1)           # [Rk, 2k] int32

    w1, b1, w2, b2 = params["w1"], params["b1"], params["w2"], params["b2"]
    # Zero-pad layer-1 weight to the lane-aligned per-group width.
    w1_pad = jnp.concatenate([w1, jnp.zeros((Cpad - C, D), w1.dtype)], axis=0)
    if k > 1:
        # Block-diagonal weights / tiled biases (built once; tiny, VMEM-resident).
        eye = jnp.eye(k, dtype=w1.dtype)
        w1_big = jnp.einsum("ab,cd->acbd", eye, w1_pad).reshape(k * Cpad, k * D)
        w2_big = jnp.einsum("ab,cd->acbd", eye, w2).reshape(k * D, k * D)
        b1_big = jnp.tile(b1, (1, k))
        b2_big = jnp.tile(b2, (1, k))
    else:
        w1_big, b1_big, w2_big, b2_big = w1_pad, b1, w2, b2

    kernel = functools.partial(_tem_embedding_kernel, k, Cpad)

    out = pl.pallas_call(
        kernel,
        out_shape=jax.ShapeDtypeStruct((Rk, k * D), jnp.float32),
        grid=(Rk // TRk,),
        in_specs=[
            pl.BlockSpec((TRk, 2 * k), lambda i: (i, 0)),        # TE targets tile
            pl.BlockSpec((k * Cpad, k * D), lambda i: (0, 0)),   # weights resident
            pl.BlockSpec((1, k * D), lambda i: (0, 0)),
            pl.BlockSpec((k * D, k * D), lambda i: (0, 0)),
            pl.BlockSpec((1, k * D), lambda i: (0, 0)),
        ],
        out_specs=pl.BlockSpec((TRk, k * D), lambda i: (i, 0)),
        compiler_params=pltpu.CompilerParams(
            dimension_semantics=("parallel",),
            vmem_limit_bytes=48 * 1024 * 1024),
    )(te_g, w1_big, b1_big, w2_big, b2_big)

    # [Rk, k*D] row-major is byte-identical to [Rp, D]; strip padding.
    out_flat = out.reshape(Rp, D)[:R]
    return out_flat.reshape(B, S, 1, D)


def init_params(key, D, T=288):
    """Deterministic synthetic init mimicking nn.Linear shapes.

    Stored transposed: w1 [295, D], w2 [D, D]; biases [1, D]."""
    k1, k2, k3, k4 = jax.random.split(key, 4)
    fin1 = 7 + T
    bound1 = 1.0 / jnp.sqrt(fin1)
    bound2 = 1.0 / jnp.sqrt(D)
    return {
        "w1": jax.random.uniform(k1, (fin1, D), jnp.float32, -bound1, bound1),
        "b1": jax.random.uniform(k2, (1, D), jnp.float32, -bound1, bound1),
        "w2": jax.random.uniform(k3, (D, D), jnp.float32, -bound2, bound2),
        "b2": jax.random.uniform(k4, (1, D), jnp.float32, -bound2, bound2),
    }


def tem_embedding_ref(TE, params, T=288):
    """Pure-JAX reference mirroring the PyTorch forward (jnp % == torch %)."""
    dow = jax.nn.one_hot(TE[..., 0] % 7, 7, dtype=jnp.float32)
    tod = jax.nn.one_hot(TE[..., 1] % T, T, dtype=jnp.float32)
    x = jnp.concatenate([dow, tod], axis=-1)[:, :, None, :]     # [B,S,1,295]
    h = jnp.maximum(x @ params["w1"] + params["b1"], 0.0)
    return h @ params["w2"] + params["b2"]


if __name__ == "__main__":
    key = jax.random.PRNGKey(0)
    k_te, k_params = jax.random.split(key)

    B, S, D, T = 2, 8, 32, 288
    # Raw (un-modded) day-of-week / time-of-day indices, including negatives
    # to exercise PyTorch-style modulo semantics.
    dow_raw = jax.random.randint(k_te, (B, S, 1), -7, 14, dtype=jnp.int32)
    tod_raw = jax.random.randint(jax.random.fold_in(k_te, 1), (B, S, 1), 0, 2 * T,
                                 dtype=jnp.int32)
    TE = jnp.concatenate([dow_raw, tod_raw], axis=-1)            # [B, S, 2]

    params = init_params(k_params, D, T)

    out = tem_embedding(TE, params, T)
    out = jax.block_until_ready(out)

    ref = tem_embedding_ref(TE, params, T)
    assert out.shape == (B, S, 1, D), out.shape
    assert jnp.allclose(out, ref, atol=1e-5, rtol=1e-5), "mismatch vs reference"

    # Second check: multi-tile grid + row padding path (R not a multiple of TR).
    B2, S2 = 4, 300                                               # R = 1200
    dow2 = jax.random.randint(jax.random.fold_in(k_te, 2), (B2, S2, 1), -7, 14,
                              dtype=jnp.int32)
    tod2 = jax.random.randint(jax.random.fold_in(k_te, 3), (B2, S2, 1), 0, 2 * T,
                              dtype=jnp.int32)
    TE2 = jnp.concatenate([dow2, tod2], axis=-1)
    out2 = jax.block_until_ready(tem_embedding(TE2, params, T, tile_rows=256))
    ref2 = tem_embedding_ref(TE2, params, T)
    assert out2.shape == (B2, S2, 1, D), out2.shape
    assert jnp.allclose(out2, ref2, atol=1e-5, rtol=1e-5), "mismatch (tiled) vs reference"

    # Third check: default (large) tile path with the 2-step grid clamp.
    out3 = jax.block_until_ready(tem_embedding(TE2, params, T))
    assert jnp.allclose(out3, ref2, atol=1e-5, rtol=1e-5), "mismatch (default tile)"

    print("KERNEL_OK")
</pallas_src>

<mosaic_0001>
module attributes {stable_mosaic.version = 11 : i64} {
  func.func @_tem_embedding_kernel(%arg0: i32, %arg1: memref<8x8xi32, #tpu.memory_space<vmem>>, %arg2: memref<1536x128xf32, #tpu.memory_space<vmem>>, %arg3: memref<1x128xf32, #tpu.memory_space<vmem>>, %arg4: memref<128x128xf32, #tpu.memory_space<vmem>>, %arg5: memref<1x128xf32, #tpu.memory_space<vmem>>, %arg6: memref<8x128xf32, #tpu.memory_space<vmem>>) attributes {dimension_semantics = [#tpu.dimension_semantics<parallel>], iteration_bounds = array<i64: 1>, scalar_prefetch = 0 : i64, scratch_operands = 0 : i64, tpu.core_type = #tpu.core_type<tc>, window_params = [{transform_indices = @transform_0, window_bounds = array<i64: 8, 8>}, {pipeline_mode = #tpu.pipeline_mode<synchronous>, transform_indices = @transform_1, window_bounds = array<i64: 1536, 128>}, {pipeline_mode = #tpu.pipeline_mode<synchronous>, transform_indices = @transform_2, window_bounds = array<i64: 1, 128>}, {pipeline_mode = #tpu.pipeline_mode<synchronous>, transform_indices = @transform_3, window_bounds = array<i64: 128, 128>}, {pipeline_mode = #tpu.pipeline_mode<synchronous>, transform_indices = @transform_4, window_bounds = array<i64: 1, 128>}, {transform_indices = @transform_5, window_bounds = array<i64: 8, 128>}]} {
    %0 = tpu.iota {dimensions = array<i32: 1>} : vector<8x384xi32>
    %c0 = arith.constant 0 : index
    %c0_0 = arith.constant 0 : index
    %1 = vector.load %arg1[%c0, %c0_0] : memref<8x8xi32, #tpu.memory_space<vmem>>, vector<8x1xi32>
    %c0_1 = arith.constant 0 : index
    %c4 = arith.constant 4 : index
    %2 = vector.load %arg1[%c0_1, %c4] : memref<8x8xi32, #tpu.memory_space<vmem>>, vector<8x1xi32>
    %3 = vector.broadcast %1 : vector<8x1xi32> to vector<8x384xi32>
    %4 = arith.cmpi eq, %0, %3 : vector<8x384xi32>
    %5 = vector.broadcast %2 : vector<8x1xi32> to vector<8x384xi32>
    %6 = arith.cmpi eq, %0, %5 : vector<8x384xi32>
    %7 = arith.ori %4, %6 : vector<8x384xi1>
    %cst = arith.constant 1.000000e+00 : f32
    %cst_2 = arith.constant 0.000000e+00 : f32
    %8 = vector.broadcast %cst : f32 to vector<8x384xf32>
    %9 = vector.broadcast %cst_2 : f32 to vector<8x384xf32>
    %10 = arith.select %7, %8, %9 : vector<8x384xi1>, vector<8x384xf32>
    %c0_3 = arith.constant 0 : index
    %c1 = arith.constant 1 : index
    %11 = vector.load %arg1[%c0_3, %c1] : memref<8x8xi32, #tpu.memory_space<vmem>>, vector<8x1xi32>
    %c0_4 = arith.constant 0 : index
    %c5 = arith.constant 5 : index
    %12 = vector.load %arg1[%c0_4, %c5] : memref<8x8xi32, #tpu.memory_space<vmem>>, vector<8x1xi32>
    %13 = vector.broadcast %11 : vector<8x1xi32> to vector<8x384xi32>
    %14 = arith.cmpi eq, %0, %13 : vector<8x384xi32>
    %15 = vector.broadcast %12 : vector<8x1xi32> to vector<8x384xi32>
    %16 = arith.cmpi eq, %0, %15 : vector<8x384xi32>
    %17 = arith.ori %14, %16 : vector<8x384xi1>
    %cst_5 = arith.constant 1.000000e+00 : f32
    %cst_6 = arith.constant 0.000000e+00 : f32
    %18 = vector.broadcast %cst_5 : f32 to vector<8x384xf32>
    %19 = vector.broadcast %cst_6 : f32 to vector<8x384xf32>
    %20 = arith.select %17, %18, %19 : vector<8x384xi1>, vector<8x384xf32>
    %c0_7 = arith.constant 0 : index
    %c2 = arith.constant 2 : index
    %21 = vector.load %arg1[%c0_7, %c2] : memref<8x8xi32, #tpu.memory_space<vmem>>, vector<8x1xi32>
    %c0_8 = arith.constant 0 : index
    %c6 = arith.constant 6 : index
    %22 = vector.load %arg1[%c0_8, %c6] : memref<8x8xi32, #tpu.memory_space<vmem>>, vector<8x1xi32>
    %23 = vector.broadcast %21 : vector<8x1xi32> to vector<8x384xi32>
    %24 = arith.cmpi eq, %0, %23 : vector<8x384xi32>
    %25 = vector.broadcast %22 : vector<8x1xi32> to vector<8x384xi32>
    %26 = arith.cmpi eq, %0, %25 : vector<8x384xi32>
    %27 = arith.ori %24, %26 : vector<8x384xi1>
    %cst_9 = arith.constant 1.000000e+00 : f32
    %cst_10 = arith.constant 0.000000e+00 : f32
    %28 = vector.broadcast %cst_9 : f32 to vector<8x384xf32>
    %29 = vector.broadcast %cst_10 : f32 to vector<8x384xf32>
    %30 = arith.select %27, %28, %29 : vector<8x384xi1>, vector<8x384xf32>
    %c0_11 = arith.constant 0 : index
    %c3 = arith.constant 3 : index
    %31 = vector.load %arg1[%c0_11, %c3] : memref<8x8xi32, #tpu.memory_space<vmem>>, vector<8x1xi32>
    %c0_12 = arith.constant 0 : index
    %c7 = arith.constant 7 : index
    %32 = vector.load %arg1[%c0_12, %c7] : memref<8x8xi32, #tpu.memory_space<vmem>>, vector<8x1xi32>
    %33 = vector.broadcast %31 : vector<8x1xi32> to vector<8x384xi32>
    %34 = arith.cmpi eq, %0, %33 : vector<8x384xi32>
    %35 = vector.broadcast %32 : vector<8x1xi32> to vector<8x384xi32>
    %36 = arith.cmpi eq, %0, %35 : vector<8x384xi32>
    %37 = arith.ori %34, %36 : vector<8x384xi1>
    %cst_13 = arith.constant 1.000000e+00 : f32
    %cst_14 = arith.constant 0.000000e+00 : f32
    %38 = vector.broadcast %cst_13 : f32 to vector<8x384xf32>
    %39 = vector.broadcast %cst_14 : f32 to vector<8x384xf32>
    %40 = arith.select %37, %38, %39 : vector<8x384xi1>, vector<8x384xf32>
    %41 = tpu.concatenate %10, %20, %30, %40 in 1 : vector<8x384xf32>, vector<8x384xf32>, vector<8x384xf32>, vector<8x384xf32> -> vector<8x1536xf32>
    %c0_15 = arith.constant 0 : index
    %c0_16 = arith.constant 0 : index
    %42 = vector.load %arg2[%c0_15, %c0_16] : memref<1536x128xf32, #tpu.memory_space<vmem>>, vector<1536x128xf32>
    %cst_17 = arith.constant dense<0.000000e+00> : vector<8x128xf32>
    %43 = tpu.matmul %41, %42, %cst_17 {dimension_numbers = #tpu.dot_dimension_numbers<[1], [0], [0], [1], [0, 0, 1, 1], [], []>} : vector<8x1536xf32>, vector<1536x128xf32>, vector<8x128xf32> -> vector<8x128xf32>
    %c0_18 = arith.constant 0 : index
    %c0_19 = arith.constant 0 : index
    %44 = vector.load %arg3[%c0_18, %c0_19] : memref<1x128xf32, #tpu.memory_space<vmem>>, vector<1x128xf32>
    %45 = vector.broadcast %44 : vector<1x128xf32> to vector<8x128xf32>
    %46 = arith.addf %43, %45 : vector<8x128xf32>
    %cst_20 = arith.constant 0.000000e+00 : f32
    %47 = vector.broadcast %cst_20 : f32 to vector<8x128xf32>
    %48 = arith.maximumf %46, %47 : vector<8x128xf32>
    %c0_21 = arith.constant 0 : index
    %c0_22 = arith.constant 0 : index
    %49 = vector.load %arg4[%c0_21, %c0_22] : memref<128x128xf32, #tpu.memory_space<vmem>>, vector<128x128xf32>
    %cst_23 = arith.constant dense<0.000000e+00> : vector<8x128xf32>
    %50 = tpu.matmul %48, %49, %cst_23 {dimension_numbers = #tpu.dot_dimension_numbers<[1], [0], [0], [1], [0, 0, 1, 1], [], []>} : vector<8x128xf32>, vector<128x128xf32>, vector<8x128xf32> -> vector<8x128xf32>
    %c0_24 = arith.constant 0 : index
    %c0_25 = arith.constant 0 : index
    %51 = vector.load %arg5[%c0_24, %c0_25] : memref<1x128xf32, #tpu.memory_space<vmem>>, vector<1x128xf32>
    %52 = vector.broadcast %51 : vector<1x128xf32> to vector<8x128xf32>
    %53 = arith.addf %50, %52 : vector<8x128xf32>
    %c0_26 = arith.constant 0 : index
    %c0_27 = arith.constant 0 : index
    %54 = vector.load %arg6[%c0_26, %c0_27] : memref<8x128xf32, #tpu.memory_space<vmem>>, vector<8x128xf32>
    tpu.vector_store %arg6[%c0_26, %c0_27], %53 {strides = array<i32>} : memref<8x128xf32, #tpu.memory_space<vmem>>, vector<8x128xf32>,
    return
  }
  func.func @transform_0(%arg0: i32) -> (i32, i32) {
    %c0_i32 = arith.constant 0 : i32
    %c0_i32_0 = arith.constant 0 : i32
    return %arg0, %c0_i32 : i32, i32
  }
  func.func @transform_1(%arg0: i32) -> (i32, i32) {
    %c0_i32 = arith.constant 0 : i32
    %c0_i32_0 = arith.constant 0 : i32
    %c0_i32_1 = arith.constant 0 : i32
    return %c0_i32, %c0_i32_0 : i32, i32
  }
  func.func @transform_2(%arg0: i32) -> (i32, i32) {
    %c0_i32 = arith.constant 0 : i32
    %c0_i32_0 = arith.constant 0 : i32
    %c0_i32_1 = arith.constant 0 : i32
    return %c0_i32, %c0_i32_0 : i32, i32
  }
  func.func @transform_3(%arg0: i32) -> (i32, i32) {
    %c0_i32 = arith.constant 0 : i32
    %c0_i32_0 = arith.constant 0 : i32
    %c0_i32_1 = arith.constant 0 : i32
    return %c0_i32, %c0_i32_0 : i32, i32
  }
  func.func @transform_4(%arg0: i32) -> (i32, i32) {
    %c0_i32 = arith.constant 0 : i32
    %c0_i32_0 = arith.constant 0 : i32
    %c0_i32_1 = arith.constant 0 : i32
    return %c0_i32, %c0_i32_0 : i32, i32
  }
  func.func @transform_5(%arg0: i32) -> (i32, i32) {
    %c0_i32 = arith.constant 0 : i32
    %c0_i32_0 = arith.constant 0 : i32
    return %arg0, %c0_i32 : i32, i32
  }
}

</mosaic_0001>

<bundles_post_ra>
// kernel: tpu_custom_call.1
= control target key start
LH: loop header
LB: loop body
LE: loop exit
PB: predicated region body
PF: predicated region fallthrough
CT: control target
= control target key end

     0   :  { %10 = vsyncpa [#allocation3], 0  ;;  %s1414_s0 = inlined_call_operand.hbm [shape: s32[8,8], index: 0, kind: input, shape index: {}]   ;;  %s1415_s1 = inlined_call_operand.hbm [shape: f32[1536,128], index: 1, kind: input, shape index: {}]   ;;  %s1416_s2 = inlined_call_operand.vmem [shape: f32[1,128], index: 2, kind: input, shape index: {}]   ;;  %s1417_s3 = inlined_call_operand.hbm [shape: f32[128,128], index: 3, kind: input, shape index: {}]   ;;  %s1418_s4 = inlined_call_operand.vmem [shape: f32[1,128], index: 4, kind: input, shape index: {}]   ;;  %s1419_s5 = inlined_call_operand.hbm [shape: f32[8,128], index: 5, kind: output, shape index: {}]  }
   0x1   :  { %11 = vsyncpa [#allocation6], 0 }
   0x2   :  { %12 = vsyncpa [#allocation4], 0  ;;  %s1255_s18 = smov [#allocation5]  }
   0x3   :  { %s28_s19 = sshll.u32 %s1255_s18, 4  ;;  %s29_s19 = int_to_ptr.vmem [resolvable:$true] %s28_s19 }
   0x4   :  { %s1177_s20 = scalar_lea.vmem %s29_s19, 24576  ;;  %p1182_p1 = scmp.lt.s32.totalorder %s29_s19, %s29_s19 }
   0x5   :  { %p1178_p0 = scmp.ne.s32.totalorder %s29_s19, %s1177_s20  ;;  %p1183_p2 = scmp.lt.s32.totalorder %s1177_s20, %s1177_s20 }
   0x7   :  { %p1184_p3 = por %p1183_p2, %p1182_p1 }
   0x9   :  { %p1185_p4 = pnand %p1184_p3, %p1178_p0 }
   0xb   :  { %1188 = shalt.err (!%p1185_p4)
}
   0xc   :  { %s1256_s21 = smov 128   ;;  %s1257_s22 = smov 8  }
   0xd   :  { %34 = dma.hbm_to_vmem [thread:$0]  %s1415_s1, 24576, %s29_s19, [#allocation6], %s1256_s21, %s1256_s21, %s1257_s22  }
   0xe   :  { %s1258_s25 = smov [#allocation2]   ;;  %s1259_s27 = smov [#allocation7]  }
   0xf   :  { %s19_s26 = sshll.u32 %s1258_s25, 4  ;;  %s42_s28 = sshll.u32 %s1259_s27, 4  ;;  %s20_s26 = int_to_ptr.vmem [resolvable:$true] %s19_s26  ;;  %s43_s28 = int_to_ptr.vmem [resolvable:$true] %s42_s28 }
  0x10   :  { %s1197_s29 = scalar_lea.vmem %s20_s26, 128  ;;  %p1202_p6 = scmp.lt.s32.totalorder %s20_s26, %s20_s26 }
  0x11   :  { %p1198_p5 = scmp.ne.s32.totalorder %s20_s26, %s1197_s29  ;;  %p1203_p7 = scmp.lt.s32.totalorder %s1197_s29, %s1197_s29 }
  0x13   :  { %p1204_p8 = por %p1203_p7, %p1202_p6 }
  0x15   :  { %p1205_p9 = pnand %p1204_p8, %p1198_p5 }
  0x17   :  { %1208 = shalt.err (!%p1205_p9)
}
  0x18   :  { %22 = dma.hbm_to_vmem [thread:$0]  %s1414_s0, 128, %s20_s26, [#allocation3]  }
  0x19   :  { %s1217_s7 = scalar_lea.vmem %s43_s28, 2048  ;;  %p1222_p11 = scmp.lt.s32.totalorder %s43_s28, %s43_s28 }
  0x1a   :  { %p1218_p10 = scmp.ne.s32.totalorder %s43_s28, %s1217_s7  ;;  %p1223_p12 = scmp.lt.s32.totalorder %s1217_s7, %s1217_s7 }
  0x1c   :  { %p1224_p13 = por %p1223_p12, %p1222_p11 }
  0x1e   :  { %p1225_p0 = pnand %p1224_p13, %p1218_p10 }
  0x20   :  { %1228 = shalt.err (!%p1225_p0)
}
  0x21   :  { %48 = dma.hbm_to_vmem [thread:$0]  %s1417_s3, 2048, %s43_s28, [#allocation6], %s1256_s21, %s1256_s21, %s1257_s22  }
  0x22   :  { %1249 = dma.done.wait [#allocation3], 128  }
  0x23   :  { %1250 = vsyncadd [#allocation3], 4294967168 }
  0x24   :  { %1251 = dma.done.wait [#allocation6], 26624  }
  0x25   :  { %1252 = vsyncadd [#allocation6], 4294940672  ;;  %v1260_v0 = vmov 1   ;;  %v1261_v1 = vmov 0   ;;  %v1311_v2 = vld [vmem:[#allocation2] sm:$0xff]  ;;  %v167_v7 = vld [vmem:[#allocation5 + $0xf0] sm:$0xff] }
  0x26   :  { %1162 = vset.pattern.permute.xlu1 %v1260_v0  ;;  %1160 = vset.pattern.permute.xlu0 %v1261_v1  ;;  %v168_v3 = vld [vmem:[#allocation5 + $0xf8] sm:$0xff]  ;;  %v199_v8 = vld [vmem:[#allocation5 + $0x1f0] sm:$0xff]  ;;  %v1262_v11 = vmov 5   ;;  %v1263_v12 = vmov 4   ;;  %v166_v13 = vld [vmem:[#allocation5 + $0xe8] sm:$0xff]  ;;  %v1264_v19 = vmov 2  }
  0x27   :  { %v200_v4 = vld [vmem:[#allocation5 + $0x1f8] sm:$0xff]  ;;  %84 = vperm.xlu1 %1162, %v1311_v2   ;;  %66 = vperm.xlu0 %1160, %v1311_v2   ;;  %v151_v9 = vld [vmem:[#allocation5 + $0x70] sm:$0xff]  ;;  %v198_v14 = vld [vmem:[#allocation5 + $0x1e8] sm:$0xff]  ;;  %v1265_v20 = vmov 6   ;;  %v1266_v29 = vmov 3   ;;  %v1267_v38 = vmov 7  }
  0x28   :  { %v152_v5 = vld [vmem:[#allocation5 + $0x78] sm:$0xff]  ;;  %881 = vmatprep.subr.mxu0 %v168_v3  ;;  %916 = vmatprep.subr.mxu1 %v200_v4  ;;  %v183_v10 = vld [vmem:[#allocation5 + $0x170] sm:$0xff]  ;;  %v150_v15 = vld [vmem:[#allocation5 + $0x68] sm:$0xff]  ;;  %s1271_s10 = smov [#allocation8]  }
  0x29   :  { %v184_v6 = vld [vmem:[#allocation5 + $0x178] sm:$0xff]  ;;  %882 = vmatpush3.msra.mxu0 %v152_v5  ;;  %v182_v16 = vld [vmem:[#allocation5 + $0x168] sm:$0xff]  ;;  %v165_v17 = vld [vmem:[#allocation5 + $0xe0] sm:$0xff]  ;;  %s857_s11 = sshll.u32 %s1271_s10, 4  ;;  %s858_s11 = int_to_ptr.vmem [resolvable:$true] %s857_s11 }
  0x2a   :  { %917 = vmatpush3.msra.mxu1 %v184_v6  ;;  %883 = vmatprep.subr.mxu0 %v167_v7  ;;  %v197_v18 = vld [vmem:[#allocation5 + $0x1e0] sm:$0xff]  ;;  %v164_v23 = vld [vmem:[#allocation5 + $0xd8] sm:$0xff]  ;;  %v163_v27 = vld [vmem:[#allocation5 + $0xd0] sm:$0xff]  ;;  %s1229_s12 = scalar_lea.vmem %s858_s11, 128  ;;  %p1234_p2 = scmp.lt.s32.totalorder %s858_s11, %s858_s11 }
  0x2b   :  { %918 = vmatprep.subr.mxu1 %v199_v8  ;;  %1163 = vset.pattern.permute.xlu1 %v1262_v11  ;;  %v149_v21 = vld [vmem:[#allocation5 + $0x60] sm:$0xff]  ;;  %v196_v24 = vld [vmem:[#allocation5 + $0x1d8] sm:$0xff]  ;;  %v195_v28 = vld [vmem:[#allocation5 + $0x1d0] sm:$0xff]  ;;  %v60_v11 = vlaneseq  ;;  %p1230_p1 = scmp.ne.s32.totalorder %s858_s11, %s1229_s12  ;;  %p1235_p3 = scmp.lt.s32.totalorder %s1229_s12, %s1229_s12 }
  0x2c   :  { %1161 = vset.pattern.permute.xlu0 %v1263_v12  ;;  %90 = vperm.xlu1 %1163, %v1311_v2   ;;  %v181_v22 = vld [vmem:[#allocation5 + $0x160] sm:$0xff]  ;;  %v148_v25 = vld [vmem:[#allocation5 + $0x58] sm:$0xff]  ;;  %v147_v30 = vld [vmem:[#allocation5 + $0x50] sm:$0xff] }
  0x2d   :  { %72 = vperm.xlu0 %1161, %v1311_v2   ;;  %884 = vmatpush3.msra.mxu0 %v151_v9  ;;  %v180_v26 = vld [vmem:[#allocation5 + $0x158] sm:$0xff]  ;;  %v179_v31 = vld [vmem:[#allocation5 + $0x150] sm:$0xff]  ;;  %v162_v32 = vld [vmem:[#allocation5 + $0xc8] sm:$0xff]  ;;  %v1323_v12 = vand.u32 127, %v60_v11  ;;  %p1236_p4 = por %p1235_p3, %p1234_p2 }
  0x2e   :  { %919 = vmatpush3.msra.mxu1 %v183_v10  ;;  %885 = vmatprep.subr.mxu0 %v166_v13  ;;  %v194_v33 = vld [vmem:[#allocation5 + $0x1c8] sm:$0xff]  ;;  %v161_v36 = vld [vmem:[#allocation5 + $0xc0] sm:$0xff]  ;;  %v160_v41 = vld [vmem:[#allocation5 + $0xb8] sm:$0xff] }
  0x2f   :  { %920 = vmatprep.subr.mxu1 %v198_v14  ;;  %886 = vmatpush3.msra.mxu0 %v150_v15  ;;  %v146_v34 = vld [vmem:[#allocation5 + $0x48] sm:$0xff]  ;;  %v193_v37 = vld [vmem:[#allocation5 + $0x1c0] sm:$0xff]  ;;  %v192_v42 = vld [vmem:[#allocation5 + $0x1b8] sm:$0xff]  ;;  %v1328_v15 = vadd.s32 128, %v1323_v12  ;;  %p1237_p5 = pnand %p1236_p4, %p1230_p1 }
  0x30   :  { %921 = vmatpush3.msra.mxu1 %v182_v16  ;;  %1164 = vset.pattern.permute.xlu1 %v1264_v19  ;;  %v178_v35 = vld [vmem:[#allocation5 + $0x148] sm:$0xff]  ;;  %v145_v39 = vld [vmem:[#allocation5 + $0x40] sm:$0xff]  ;;  %v144_v43 = vld [vmem:[#allocation5 + $0x38] sm:$0xff]  ;;  %v1268_v19 = vmov 1.0  }
  0x31   :  { %1165 = vset.pattern.permute.xlu0 %v1265_v20  ;;  %102 = vperm.xlu1 %1164, %v1311_v2   ;;  %v177_v40 = vld [vmem:[#allocation5 + $0x140] sm:$0xff]  ;;  %v176_v44 = vld [vmem:[#allocation5 + $0x138] sm:$0xff]  ;;  %v159_v45 = vld [vmem:[#allocation5 + $0xb0] sm:$0xff] }
  0x32   :  { %108 = vperm.xlu0 %1165, %v1311_v2   ;;  %887 = vmatprep.subr.mxu0 %v165_v17  ;;  %v191_v46 = vld [vmem:[#allocation5 + $0x1b0] sm:$0xff]  ;;  %v158_v49 = vld [vmem:[#allocation5 + $0xa8] sm:$0xff]  ;;  %v157_v53 = vld [vmem:[#allocation5 + $0xa0] sm:$0xff] }
  0x33   :  { %922 = vmatprep.subr.mxu1 %v197_v18  ;;  %888 = vmatpush3.msra.mxu0 %v149_v21  ;;  %v143_v47 = vld [vmem:[#allocation5 + $0x30] sm:$0xff]  ;;  %v190_v50 = vld [vmem:[#allocation5 + $0x1a8] sm:$0xff]  ;;  %v189_v54 = vld [vmem:[#allocation5 + $0x1a0] sm:$0xff]  ;;  %v1333_v18 = vadd.s32 256, %v1323_v12 }
  0x34   :  { %923 = vmatpush3.msra.mxu1 %v181_v22  ;;  %889 = vmatprep.subr.mxu0 %v164_v23  ;;  %v175_v48 = vld [vmem:[#allocation5 + $0x130] sm:$0xff]  ;;  %v142_v51 = vld [vmem:[#allocation5 + $0x28] sm:$0xff]  ;;  %v141_v55 = vld [vmem:[#allocation5 + $0x20] sm:$0xff] }
  0x35   :  { %924 = vmatprep.subr.mxu1 %v196_v24  ;;  %1166 = vset.pattern.permute.xlu1 %v1266_v29  ;;  %v174_v52 = vld [vmem:[#allocation5 + $0x128] sm:$0xff]  ;;  %v173_v56 = vld [vmem:[#allocation5 + $0x120] sm:$0xff]  ;;  %v156_v57 = vld [vmem:[#allocation5 + $0x98] sm:$0xff] }
  0x36   :  { %890 = vmatpush3.msra.mxu0 %v148_v25  ;;  %120 = vperm.xlu1 %1166, %v1311_v2   ;;  %v188_v58 = vld [vmem:[#allocation5 + $0x198] sm:$0xff]  ;;  %v155_v61 = vld [vmem:[#allocation5 + $0x90] sm:$0xff]  ;;  %v154_v1 = vld [vmem:[#allocation5 + $0x88] sm:$0xff] }
  0x37   :  { %925 = vmatpush3.msra.mxu1 %v180_v26  ;;  %891 = vmatprep.subr.mxu0 %v163_v27  ;;  %v140_v59 = vld [vmem:[#allocation5 + $0x18] sm:$0xff]  ;;  %v187_v62 = vld [vmem:[#allocation5 + $0x190] sm:$0xff]  ;;  %v138_v3 = vld [vmem:[#allocation5 + $0x8] sm:$0xff] }
  0x38   :  { %926 = vmatprep.subr.mxu1 %v195_v28  ;;  %892 = vmatpush3.msra.mxu0 %v147_v30  ;;  %v172_v60 = vld [vmem:[#allocation5 + $0x118] sm:$0xff]  ;;  %v139_v63 = vld [vmem:[#allocation5 + $0x10] sm:$0xff]  ;;  %v170_v4 = vld [vmem:[#allocation5 + $0x108] sm:$0xff] }
  0x39   :  { %927 = vmatpush3.msra.mxu1 %v179_v31  ;;  %893 = vmatprep.subr.mxu0 %v162_v32  ;;  %v171_v0 = vld [vmem:[#allocation5 + $0x110] sm:$0xff]  ;;  %v153_v5 = vld [vmem:[#allocation5 + $0x80] sm:$0xff]  ;;  %v232_v9 = vld [vmem:[#allocation5 + $0x2f8] sm:$0xff] }
  0x3a   :  { %928 = vmatprep.subr.mxu1 %v194_v33  ;;  %1167 = vset.pattern.permute.xlu1 %v1267_v38  ;;  %v185_v6 = vld [vmem:[#allocation5 + $0x180] sm:$0xff]  ;;  %v264_v10 = vld [vmem:[#allocation5 + $0x3f8] sm:$0xff]  ;;  %v231_v22 = vld [vmem:[#allocation5 + $0x2f0] sm:$0xff] }
  0x3b   :  { %894 = vmatpush3.msra.mxu0 %v146_v34  ;;  %126 = vperm.xlu1 %1167, %v1311_v2   ;;  %v186_v2 = vld [vmem:[#allocation5 + $0x188] sm:$0xff]  ;;  %v137_v7 = vld [vmem:[#allocation5] sm:$0xff]  ;;  %v216_v20 = vld [vmem:[#allocation5 + $0x278] sm:$0xff] }
  0x3c   :  { %929 = vmatpush3.msra.mxu1 %v178_v35  ;;  %895 = vmatprep.subr.mxu0 %v161_v36  ;;  %v169_v8 = vld [vmem:[#allocation5 + $0x100] sm:$0xff]  ;;  %v248_v21 = vld [vmem:[#allocation5 + $0x378] sm:$0xff]  ;;  %v263_v23 = vld [vmem:[#allocation5 + $0x3f0] sm:$0xff] }
  0x3d   :  { %930 = vmatprep.subr.mxu1 %v193_v37  ;;  %896 = vmatpush3.msra.mxu0 %v145_v39  ;;  %v215_v24 = vld [vmem:[#allocation5 + $0x270] sm:$0xff]  ;;  %v230_v26 = vld [vmem:[#allocation5 + $0x2e8] sm:$0xff]  ;;  %v229_v30 = vld [vmem:[#allocation5 + $0x2e0] sm:$0xff] }
  0x3e   :  { %931 = vmatpush3.msra.mxu1 %v177_v40  ;;  %897 = vmatprep.subr.mxu0 %v160_v41  ;;  %v247_v25 = vld [vmem:[#allocation5 + $0x370] sm:$0xff]  ;;  %v262_v27 = vld [vmem:[#allocation5 + $0x3e8] sm:$0xff]  ;;  %v261_v31 = vld [vmem:[#allocation5 + $0x3e0] sm:$0xff] }
  0x3f   :  { %932 = vmatprep.subr.mxu1 %v192_v42  ;;  %898 = vmatpush3.msra.mxu0 %v144_v43  ;;  %v214_v28 = vld [vmem:[#allocation5 + $0x268] sm:$0xff]  ;;  %v213_v32 = vld [vmem:[#allocation5 + $0x260] sm:$0xff]  ;;  %v228_v34 = vld [vmem:[#allocation5 + $0x2d8] sm:$0xff] }
  0x40   :  { %933 = vmatpush3.msra.mxu1 %v176_v44  ;;  %899 = vmatprep.subr.mxu0 %v159_v45  ;;  %v246_v29 = vld [vmem:[#allocation5 + $0x368] sm:$0xff]  ;;  %v245_v33 = vld [vmem:[#allocation5 + $0x360] sm:$0xff]  ;;  %v260_v35 = vld [vmem:[#allocation5 + $0x3d8] sm:$0xff] }
  0x41   :  { %934 = vmatprep.subr.mxu1 %v191_v46  ;;  %900 = vmatpush3.msra.mxu0 %v143_v47  ;;  %v212_v36 = vld [vmem:[#allocation5 + $0x258] sm:$0xff]  ;;  %v259_v39 = vld [vmem:[#allocation5 + $0x3d0] sm:$0xff]  ;;  %v226_v42 = vld [vmem:[#allocation5 + $0x2c8] sm:$0xff] }
  0x42   :  { %935 = vmatpush3.msra.mxu1 %v175_v48  ;;  %901 = vmatprep.subr.mxu0 %v158_v49  ;;  %v244_v37 = vld [vmem:[#allocation5 + $0x358] sm:$0xff]  ;;  %v211_v40 = vld [vmem:[#allocation5 + $0x250] sm:$0xff]  ;;  %v258_v43 = vld [vmem:[#allocation5 + $0x3c8] sm:$0xff] }
  0x43   :  { %936 = vmatprep.subr.mxu1 %v190_v50  ;;  %902 = vmatpush3.msra.mxu0 %v142_v51  ;;  %v243_v41 = vld [vmem:[#allocation5 + $0x350] sm:$0xff]  ;;  %v210_v44 = vld [vmem:[#allocation5 + $0x248] sm:$0xff]  ;;  %v225_v46 = vld [vmem:[#allocation5 + $0x2c0] sm:$0xff] }
  0x44   :  { %937 = vmatpush3.msra.mxu1 %v174_v52  ;;  %903 = vmatprep.subr.mxu0 %v157_v53  ;;  %v242_v45 = vld [vmem:[#allocation5 + $0x348] sm:$0xff]  ;;  %v257_v47 = vld [vmem:[#allocation5 + $0x3c0] sm:$0xff]  ;;  %v224_v50 = vld [vmem:[#allocation5 + $0x2b8] sm:$0xff] }
  0x45   :  { %938 = vmatprep.subr.mxu1 %v189_v54  ;;  %904 = vmatpush3.msra.mxu0 %v141_v55  ;;  %v209_v48 = vld [vmem:[#allocation5 + $0x240] sm:$0xff]  ;;  %v256_v51 = vld [vmem:[#allocation5 + $0x3b8] sm:$0xff]  ;;  %v223_v54 = vld [vmem:[#allocation5 + $0x2b0] sm:$0xff] }
  0x46   :  { %939 = vmatpush3.msra.mxu1 %v173_v56  ;;  %905 = vmatprep.subr.mxu0 %v156_v57  ;;  %v241_v49 = vld [vmem:[#allocation5 + $0x340] sm:$0xff]  ;;  %v208_v52 = vld [vmem:[#allocation5 + $0x238] sm:$0xff]  ;;  %v255_v55 = vld [vmem:[#allocation5 + $0x3b0] sm:$0xff] }
  0x47   :  { %940 = vmatprep.subr.mxu1 %v188_v58  ;;  %906 = vmatpush3.msra.mxu0 %v140_v59  ;;  %v240_v53 = vld [vmem:[#allocation5 + $0x338] sm:$0xff]  ;;  %v207_v56 = vld [vmem:[#allocation5 + $0x230] sm:$0xff]  ;;  %v222_v58 = vld [vmem:[#allocation5 + $0x2a8] sm:$0xff] }
  0x48   :  { %941 = vmatpush3.msra.mxu1 %v172_v60  ;;  %907 = vmatprep.subr.mxu0 %v155_v61  ;;  %v239_v57 = vld [vmem:[#allocation5 + $0x330] sm:$0xff]  ;;  %v254_v59 = vld [vmem:[#allocation5 + $0x3a8] sm:$0xff] }
  0x49   :  { %942 = vmatprep.subr.mxu1 %v187_v62  ;;  %908 = vmatpush3.msra.mxu0 %v139_v63  ;;  %v206_v60 = vld [vmem:[#allocation5 + $0x228] sm:$0xff]  ;;  %v221_v62 = vld [vmem:[#allocation5 + $0x2a0] sm:$0xff]  ;;  %v235_v11 = vld [vmem:[#allocation5 + $0x310] sm:$0xff] }
  0x4a   :  { %943 = vmatpush3.msra.mxu1 %v171_v0  ;;  %909 = vmatprep.subr.mxu0 %v154_v1  ;;  %v238_v61 = vld [vmem:[#allocation5 + $0x328] sm:$0xff]  ;;  %v253_v63 = vld [vmem:[#allocation5 + $0x3a0] sm:$0xff] }
  0x4b   :  { %944 = vmatprep.subr.mxu1 %v186_v2  ;;  %910 = vmatpush3.msra.mxu0 %v138_v3  ;;  %v205_v0 = vld [vmem:[#allocation5 + $0x220] sm:$0xff]  ;;  %v220_v2 = vld [vmem:[#allocation5 + $0x298] sm:$0xff] }
  0x4c   :  { %945 = vmatpush3.msra.mxu1 %v170_v4  ;;  %911 = vmatprep.subr.mxu0 %v153_v5  ;;  %v237_v1 = vld [vmem:[#allocation5 + $0x320] sm:$0xff]  ;;  %v252_v3 = vld [vmem:[#allocation5 + $0x398] sm:$0xff] }
  0x4d   :  { %946 = vmatprep.subr.mxu1 %v185_v6  ;;  %912 = vmatpush3.msra.mxu0 %v137_v7  ;;  %v204_v4 = vld [vmem:[#allocation5 + $0x218] sm:$0xff]  ;;  %v219_v6 = vld [vmem:[#allocation5 + $0x290] sm:$0xff] }
  0x4e   :  { %947 = vmatpush3.msra.mxu1 %v169_v8  ;;  %951 = vmatprep.subr.mxu0 %v232_v9  ;;  %v236_v5 = vld [vmem:[#allocation5 + $0x318] sm:$0xff]  ;;  %v251_v7 = vld [vmem:[#allocation5 + $0x390] sm:$0xff] }
  0x4f   :  { %986 = vmatprep.subr.mxu1 %v264_v10  ;;  %1168 = vset.pattern.permute.xlu0 %v1267_v38  ;;  %v227_v38 = vld [vmem:[#allocation5 + $0x2d0] sm:$0xff] }
  0x50   :  { %v203_v10 = vld [vmem:[#allocation5 + $0x210] sm:$0xff] }
  0xa2   :  { %v67_v13 = vpop.permute.xlu0 %66  ;;  %v1325_v14 = vpop.permute.xlu1 %84 }
  0xa3   :  { %vm69_vm1 = vcmp.eq.s32.totalorder %v1328_v15, %v67_v13  ;;  %vm86_vm6 = vcmp.eq.s32.totalorder %v1323_v12, %v1325_v14  ;;  %vm68_vm7 = vcmp.eq.s32.totalorder %v1323_v12, %v67_v13  ;;  %vm70_vm9 = vcmp.eq.s32.totalorder %v1333_v18, %v67_v13  ;;  %v218_v13 = vld [vmem:[#allocation5 + $0x288] sm:$0xff] }
  0xa4   :  { %vm88_vm13 = vcmp.eq.s32.totalorder %v1333_v18, %v1325_v14 }
  0xa7   :  { %v1330_v16 = vpop.permute.xlu1 %90 }
  0xa8   :  { %v73_v17 = vpop.permute.xlu0 %72  ;;  %vm92_vm3 = vcmp.eq.s32.totalorder %v1323_v12, %v1330_v16  ;;  %vm94_vm10 = vcmp.eq.s32.totalorder %v1333_v18, %v1330_v16 }
  0xa9   :  { %vm74_vm0 = vcmp.eq.s32.totalorder %v1323_v12, %v73_v17  ;;  %vm75_vm2 = vcmp.eq.s32.totalorder %v1328_v15, %v73_v17  ;;  %vm76_vm4 = vcmp.eq.s32.totalorder %v1333_v18, %v73_v17  ;;  %vm95_vm8 = vmor %vm86_vm6, %vm92_vm3  ;;  %v250_v17 = vld [vmem:[#allocation5 + $0x388] sm:$0xff]  ;;  %vm93_vm3 = vcmp.eq.s32.totalorder %v1328_v15, %v1330_v16  ;;  %v328_v16 = vld [vmem:[#allocation5 + $0x5f8] sm:$0xff] }
  0xaa   :  { %vm78_vm5 = vmor %vm69_vm1, %vm75_vm2  ;;  %870 = vmatprep.mubr.msk.f32.mxu1 %vm95_vm8, %v1268_v19 }
  0xab   :  { %868 = vmatprep.mubr.msk.f32.mxu0 %vm78_vm5, %v1268_v19  ;;  %vm77_vm11 = vmor %vm68_vm7, %vm74_vm0  ;;  %vm87_vm5 = vcmp.eq.s32.totalorder %v1328_v15, %v1325_v14  ;;  %v279_v14 = vld [vmem:[#allocation5 + $0x470] sm:$0xff] }
  0xac   :  { %869 = vmatmul.mubr.msk.f32.vlgmr.msra.gmra.mxu0 %vm77_vm11, %v1268_v19  ;;  %vm79_vm12 = vmor %vm70_vm9, %vm76_vm4  ;;  %v1361_v8 = vpop.permute.xlu1 %102 }
  0xad   :  { %871 = vmatmul.mubr.msk.f32.vlgmr.msra.gmra.mxu1 %vm79_vm12, %v1268_v19  ;;  %952 = vmatpush3.msra.mxu0 %v216_v20  ;;  %vm97_vm14 = vmor %vm88_vm13, %vm94_vm10  ;;  %v1363_v9 = vpop.permute.xlu0 %108  ;;  %vm105_vm15 = vcmp.eq.s32.totalorder %v1328_v15, %v1361_v8  ;;  %v202_v20 = vld [vmem:[#allocation5 + $0x208] sm:$0xff]  ;;  %vm104_vm1 = vcmp.eq.s32.totalorder %v1323_v12, %v1361_v8 }
  0xae   :  { %987 = vmatpush3.msra.mxu1 %v248_v21  ;;  %953 = vmatprep.subr.mxu0 %v231_v22  ;;  %vm111_vm0 = vcmp.eq.s32.totalorder %v1328_v15, %v1363_v9  ;;  %v234_v21 = vld [vmem:[#allocation5 + $0x308] sm:$0xff]  ;;  %vm110_vm2 = vcmp.eq.s32.totalorder %v1323_v12, %v1363_v9  ;;  %v217_v22 = vld [vmem:[#allocation5 + $0x280] sm:$0xff]  ;;  %vm96_vm7 = vmor %vm87_vm5, %vm93_vm3 }
  0xaf   :  { %872 = vmatprep.mubr.msk.f32.mxu0 %vm97_vm14, %v1268_v19  ;;  %988 = vmatprep.subr.mxu1 %v263_v23  ;;  %v249_v23 = vld [vmem:[#allocation5 + $0x380] sm:$0xff]  ;;  %vm114_vm4 = vmor %vm105_vm15, %vm111_vm0  ;;  %vm106_vm14 = vcmp.eq.s32.totalorder %v1333_v18, %v1361_v8  ;;  %vm112_vm15 = vcmp.eq.s32.totalorder %v1333_v18, %v1363_v9  ;;  %v1269_v8 = vmov 0.0   ;;  %v771_v9 = vld [vmem:[#allocation7 + $0x70] sm:$0xff] }
  0xb0   :  { %954 = vmatpush3.msra.mxu0 %v215_v24  ;;  %989 = vmatpush3.msra.mxu1 %v247_v25  ;;  %v201_v24 = vld [vmem:[#allocation5 + $0x200] sm:$0xff]  ;;  %vm113_vm6 = vmor %vm104_vm1, %vm110_vm2 }
  0xb1   :  { %955 = vmatprep.subr.mxu0 %v230_v26  ;;  %990 = vmatprep.subr.mxu1 %v262_v27  ;;  %v233_v25 = vld [vmem:[#allocation5 + $0x300] sm:$0xff]  ;;  %v296_v26 = vld [vmem:[#allocation5 + $0x4f8] sm:$0xff]  ;;  %vm115_vm2 = vmor %vm106_vm14, %vm112_vm15 }
  0xb2   :  { %956 = vmatpush3.msra.mxu0 %v214_v28  ;;  %991 = vmatpush3.msra.mxu1 %v246_v29  ;;  %v280_v27 = vld [vmem:[#allocation5 + $0x478] sm:$0xff]  ;;  %v295_v29 = vld [vmem:[#allocation5 + $0x4f0] sm:$0xff] }
  0xb3   :  { %957 = vmatprep.subr.mxu0 %v229_v30  ;;  %992 = vmatprep.subr.mxu1 %v261_v31  ;;  %v312_v28 = vld [vmem:[#allocation5 + $0x578] sm:$0xff]  ;;  %v327_v30 = vld [vmem:[#allocation5 + $0x5f0] sm:$0xff] }
  0xb4   :  { %958 = vmatpush3.msra.mxu0 %v213_v32  ;;  %993 = vmatpush3.msra.mxu1 %v245_v33  ;;  %v311_v31 = vld [vmem:[#allocation5 + $0x570] sm:$0xff]  ;;  %v294_v32 = vld [vmem:[#allocation5 + $0x4e8] sm:$0xff] }
  0xb5   :  { %959 = vmatprep.subr.mxu0 %v228_v34  ;;  %994 = vmatprep.subr.mxu1 %v260_v35  ;;  %v326_v33 = vld [vmem:[#allocation5 + $0x5e8] sm:$0xff] }
  0xb6   :  { %960 = vmatpush3.msra.mxu0 %v212_v36  ;;  %995 = vmatpush3.msra.mxu1 %v244_v37  ;;  %v278_v34 = vld [vmem:[#allocation5 + $0x468] sm:$0xff]  ;;  %v293_v36 = vld [vmem:[#allocation5 + $0x4e0] sm:$0xff] }
  0xb7   :  { %961 = vmatprep.subr.mxu0 %v227_v38  ;;  %996 = vmatprep.subr.mxu1 %v259_v39  ;;  %v310_v35 = vld [vmem:[#allocation5 + $0x568] sm:$0xff]  ;;  %v325_v37 = vld [vmem:[#allocation5 + $0x5e0] sm:$0xff] }
  0xb8   :  { %962 = vmatpush3.msra.mxu0 %v211_v40  ;;  %997 = vmatpush3.msra.mxu1 %v243_v41  ;;  %v277_v38 = vld [vmem:[#allocation5 + $0x460] sm:$0xff]  ;;  %v292_v40 = vld [vmem:[#allocation5 + $0x4d8] sm:$0xff] }
  0xb9   :  { %963 = vmatprep.subr.mxu0 %v226_v42  ;;  %998 = vmatprep.subr.mxu1 %v258_v43  ;;  %v309_v39 = vld [vmem:[#allocation5 + $0x560] sm:$0xff]  ;;  %v324_v41 = vld [vmem:[#allocation5 + $0x5d8] sm:$0xff] }
  0xba   :  { %964 = vmatpush3.msra.mxu0 %v210_v44  ;;  %999 = vmatpush3.msra.mxu1 %v242_v45  ;;  %v276_v42 = vld [vmem:[#allocation5 + $0x458] sm:$0xff]  ;;  %v291_v44 = vld [vmem:[#allocation5 + $0x4d0] sm:$0xff] }
  0xbb   :  { %965 = vmatprep.subr.mxu0 %v225_v46  ;;  %1000 = vmatprep.subr.mxu1 %v257_v47  ;;  %v308_v43 = vld [vmem:[#allocation5 + $0x558] sm:$0xff]  ;;  %v323_v45 = vld [vmem:[#allocation5 + $0x5d0] sm:$0xff] }
  0xbc   :  { %966 = vmatpush3.msra.mxu0 %v209_v48  ;;  %1001 = vmatpush3.msra.mxu1 %v241_v49  ;;  %v275_v46 = vld [vmem:[#allocation5 + $0x450] sm:$0xff]  ;;  %v290_v48 = vld [vmem:[#allocation5 + $0x4c8] sm:$0xff] }
  0xbd   :  { %967 = vmatprep.subr.mxu0 %v224_v50  ;;  %1002 = vmatprep.subr.mxu1 %v256_v51  ;;  %v307_v47 = vld [vmem:[#allocation5 + $0x550] sm:$0xff]  ;;  %v322_v49 = vld [vmem:[#allocation5 + $0x5c8] sm:$0xff] }
  0xbe   :  { %968 = vmatpush3.msra.mxu0 %v208_v52  ;;  %1003 = vmatpush3.msra.mxu1 %v240_v53  ;;  %v274_v50 = vld [vmem:[#allocation5 + $0x448] sm:$0xff]  ;;  %v289_v52 = vld [vmem:[#allocation5 + $0x4c0] sm:$0xff] }
  0xbf   :  { %969 = vmatprep.subr.mxu0 %v223_v54  ;;  %1004 = vmatprep.subr.mxu1 %v255_v55  ;;  %v306_v51 = vld [vmem:[#allocation5 + $0x548] sm:$0xff]  ;;  %v321_v53 = vld [vmem:[#allocation5 + $0x5c0] sm:$0xff]  ;;  %v1383_v55 = vpop.permute.xlu1 %120 }
  0xc0   :  { %970 = vmatpush3.msra.mxu0 %v207_v56  ;;  %1005 = vmatpush3.msra.mxu1 %v239_v57  ;;  %v273_v54 = vld [vmem:[#allocation5 + $0x440] sm:$0xff]  ;;  %v288_v57 = vld [vmem:[#allocation5 + $0x4b8] sm:$0xff]  ;;  %vm122_vm8 = vcmp.eq.s32.totalorder %v1323_v12, %v1383_v55  ;;  %vm124_vm10 = vcmp.eq.s32.totalorder %v1333_v18, %v1383_v55  ;;  %vm123_vm0 = vcmp.eq.s32.totalorder %v1328_v15, %v1383_v55 }
  0xc1   :  { %971 = vmatprep.subr.mxu0 %v222_v58  ;;  %1006 = vmatprep.subr.mxu1 %v254_v59  ;;  %v305_v56 = vld [vmem:[#allocation5 + $0x540] sm:$0xff]  ;;  %v320_v58 = vld [vmem:[#allocation5 + $0x5b8] sm:$0xff] }
  0xc2   :  { %972 = vmatpush3.msra.mxu0 %v206_v60  ;;  %1007 = vmatpush3.msra.mxu1 %v238_v61  ;;  %v272_v59 = vld [vmem:[#allocation5 + $0x438] sm:$0xff]  ;;  %v287_v61 = vld [vmem:[#allocation5 + $0x4b0] sm:$0xff] }
  0xc3   :  { %973 = vmatprep.subr.mxu0 %v221_v62  ;;  %1008 = vmatprep.subr.mxu1 %v253_v63  ;;  %v304_v60 = vld [vmem:[#allocation5 + $0x538] sm:$0xff]  ;;  %v319_v62 = vld [vmem:[#allocation5 + $0x5b0] sm:$0xff] }
  0xc4   :  { %974 = vmatpush3.msra.mxu0 %v205_v0  ;;  %1009 = vmatpush3.msra.mxu1 %v237_v1  ;;  %v271_v63 = vld [vmem:[#allocation5 + $0x430] sm:$0xff]  ;;  %v286_v1 = vld [vmem:[#allocation5 + $0x4a8] sm:$0xff] }
  0xc5   :  { %975 = vmatprep.subr.mxu0 %v220_v2  ;;  %1010 = vmatprep.subr.mxu1 %v252_v3  ;;  %v303_v0 = vld [vmem:[#allocation5 + $0x530] sm:$0xff]  ;;  %v318_v2 = vld [vmem:[#allocation5 + $0x5a8] sm:$0xff] }
  0xc6   :  { %976 = vmatpush3.msra.mxu0 %v204_v4  ;;  %1011 = vmatpush3.msra.mxu1 %v236_v5  ;;  %v270_v3 = vld [vmem:[#allocation5 + $0x428] sm:$0xff]  ;;  %v127_v4 = vpop.permute.xlu1 %126 }
  0xc7   :  { %977 = vmatprep.subr.mxu0 %v219_v6  ;;  %1012 = vmatprep.subr.mxu1 %v251_v7  ;;  %v302_v5 = vld [vmem:[#allocation5 + $0x528] sm:$0xff]  ;;  %v285_v6 = vld [vmem:[#allocation5 + $0x4a0] sm:$0xff]  ;;  %vm128_vm9 = vcmp.eq.s32.totalorder %v1323_v12, %v127_v4  ;;  %vm130_vm11 = vcmp.eq.s32.totalorder %v1333_v18, %v127_v4  ;;  %vm129_vm1 = vcmp.eq.s32.totalorder %v1328_v15, %v127_v4  ;;  %v772_v18 = vld [vmem:[#allocation7 + $0x78] sm:$0xff] }
  0xc8   :  { %978 = vmatpush3.msra.mxu0 %v203_v10  ;;  %1013 = vmatpush3.msra.mxu1 %v235_v11  ;;  %v317_v7 = vld [vmem:[#allocation5 + $0x5a0] sm:$0xff]  ;;  %vm131_vm12 = vmor %vm122_vm8, %vm128_vm9  ;;  %v298_v12 = vld [vmem:[#allocation5 + $0x508] sm:$0xff] }
  0xc9   :  { %979 = vmatprep.subr.mxu0 %v218_v13  ;;  %1014 = vmatprep.subr.mxu1 %v250_v17  ;;  %v269_v10 = vld [vmem:[#allocation5 + $0x420] sm:$0xff]  ;;  %v284_v13 = vld [vmem:[#allocation5 + $0x498] sm:$0xff]  ;;  %vm133_vm13 = vmor %vm124_vm10, %vm130_vm11 }
  0xca   :  { %980 = vmatpush3.msra.mxu0 %v202_v20  ;;  %1015 = vmatpush3.msra.mxu1 %v234_v21  ;;  %v301_v11 = vld [vmem:[#allocation5 + $0x520] sm:$0xff]  ;;  %v316_v17 = vld [vmem:[#allocation5 + $0x598] sm:$0xff]  ;;  %vm132_vm3 = vmor %vm123_vm0, %vm129_vm1 }
  0xcb   :  { %981 = vmatprep.subr.mxu0 %v217_v22  ;;  %1016 = vmatprep.subr.mxu1 %v249_v23  ;;  %v268_v20 = vld [vmem:[#allocation5 + $0x418] sm:$0xff]  ;;  %v283_v22 = vld [vmem:[#allocation5 + $0x490] sm:$0xff]  ;;  %v770_v15 = vld [vmem:[#allocation7 + $0x68] sm:$0xff] }
  0xcc   :  { %982 = vmatpush3.msra.mxu0 %v201_v24  ;;  %1017 = vmatpush3.msra.mxu1 %v233_v25  ;;  %v300_v21 = vld [vmem:[#allocation5 + $0x518] sm:$0xff]  ;;  %v315_v23 = vld [vmem:[#allocation5 + $0x590] sm:$0xff] }
  0xcd   :  { %874 = vmatprep.mubr.msk.f32.mxu1 %vm114_vm4, %v1268_v19  ;;  %873 = vmatmul.mubr.msk.f32.vlgmr.msra.gmra.mxu0 %vm96_vm7, %v1268_v19  ;;  %v267_v24 = vld [vmem:[#allocation5 + $0x410] sm:$0xff]  ;;  %vm1270_vm4 = vmmov 0  }
  0xce   :  { %875 = vmatmul.mubr.msk.f32.vlgmr.msra.gmra.mxu1 %vm113_vm6, %v1268_v19  ;;  %1021 = vmatprep.subr.mxu0 %v296_v26  ;;  %v299_v25 = vld [vmem:[#allocation5 + $0x510] sm:$0xff]  ;;  %v282_v26 = vld [vmem:[#allocation5 + $0x488] sm:$0xff] }
  0xcf   :  { %1056 = vmatprep.subr.mxu1 %v328_v16  ;;  %1022 = vmatpush3.msra.mxu0 %v280_v27  ;;  %v314_v16 = vld [vmem:[#allocation5 + $0x588] sm:$0xff] }
  0xd0   :  { %1057 = vmatpush3.msra.mxu1 %v312_v28  ;;  %1023 = vmatprep.subr.mxu0 %v295_v29  ;;  %v266_v27 = vld [vmem:[#allocation5 + $0x408] sm:$0xff]  ;;  %v281_v28 = vld [vmem:[#allocation5 + $0x480] sm:$0xff] }
  0xd1   :  { %1058 = vmatprep.subr.mxu1 %v327_v30  ;;  %1024 = vmatpush3.msra.mxu0 %v279_v14  ;;  %v313_v29 = vld [vmem:[#allocation5 + $0x580] sm:$0xff] }
  0xd2   :  { %1059 = vmatpush3.msra.mxu1 %v311_v31  ;;  %1025 = vmatprep.subr.mxu0 %v294_v32  ;;  %v265_v30 = vld [vmem:[#allocation5 + $0x400] sm:$0xff]  ;;  %v768_v32 = vld [vmem:[#allocation7 + $0x58] sm:$0xff] }
  0xd3   :  { %1060 = vmatprep.subr.mxu1 %v326_v33  ;;  %1026 = vmatpush3.msra.mxu0 %v278_v34  ;;  %v297_v14 = vld [vmem:[#allocation5 + $0x500] sm:$0xff]  ;;  %v767_v33 = vld [vmem:[#allocation7 + $0x50] sm:$0xff]  ;;  %v766_v34 = vld [vmem:[#allocation7 + $0x48] sm:$0xff] }
  0xd4   :  { %1061 = vmatpush3.msra.mxu1 %v310_v35  ;;  %1027 = vmatprep.subr.mxu0 %v293_v36  ;;  %v769_v31 = vld [vmem:[#allocation7 + $0x60] sm:$0xff]  ;;  %v764_v35 = vld [vmem:[#allocation7 + $0x38] sm:$0xff]  ;;  %v763_v36 = vld [vmem:[#allocation7 + $0x30] sm:$0xff] }
  0xd5   :  { %1062 = vmatprep.subr.mxu1 %v325_v37  ;;  %1028 = vmatpush3.msra.mxu0 %v277_v38  ;;  %v762_v37 = vld [vmem:[#allocation7 + $0x28] sm:$0xff]  ;;  %v761_v38 = vld [vmem:[#allocation7 + $0x20] sm:$0xff] }
  0xd6   :  { %1063 = vmatpush3.msra.mxu1 %v309_v39  ;;  %1029 = vmatprep.subr.mxu0 %v292_v40  ;;  %v760_v39 = vld [vmem:[#allocation7 + $0x18] sm:$0xff]  ;;  %v759_v40 = vld [vmem:[#allocation7 + $0x10] sm:$0xff] }
  0xd7   :  { %1064 = vmatprep.subr.mxu1 %v324_v41  ;;  %1030 = vmatpush3.msra.mxu0 %v276_v42  ;;  %v758_v41 = vld [vmem:[#allocation7 + $0x8] sm:$0xff]  ;;  %v757_v42 = vld [vmem:[#allocation7] sm:$0xff] }
  0xd8   :  { %1065 = vmatpush3.msra.mxu1 %v308_v43  ;;  %1031 = vmatprep.subr.mxu0 %v291_v44 }
  0xd9   :  { %1066 = vmatprep.subr.mxu1 %v323_v45  ;;  %1032 = vmatpush3.msra.mxu0 %v275_v46 }
  0xda   :  { %1067 = vmatpush3.msra.mxu1 %v307_v47  ;;  %1033 = vmatprep.subr.mxu0 %v290_v48  ;;  %v867_v48 = vld [vmem:[%s1416_s2] ss:$0 sm:$0xff] }
  0xdb   :  { %1068 = vmatprep.subr.mxu1 %v322_v49  ;;  %1034 = vmatpush3.msra.mxu0 %v274_v50 }
  0xdc   :  { %1069 = vmatpush3.msra.mxu1 %v306_v51  ;;  %1035 = vmatprep.subr.mxu0 %v289_v52 }
  0xdd   :  { %1070 = vmatprep.subr.mxu1 %v321_v53  ;;  %1036 = vmatpush3.msra.mxu0 %v273_v54 }
  0xde   :  { %1071 = vmatpush3.msra.mxu1 %v305_v56  ;;  %1037 = vmatprep.subr.mxu0 %v288_v57 }
  0xdf   :  { %1072 = vmatprep.subr.mxu1 %v320_v58  ;;  %1038 = vmatpush3.msra.mxu0 %v272_v59 }
  0xe0   :  { %1073 = vmatpush3.msra.mxu1 %v304_v60  ;;  %1039 = vmatprep.subr.mxu0 %v287_v61 }
  0xe1   :  { %1074 = vmatprep.subr.mxu1 %v319_v62  ;;  %1040 = vmatpush3.msra.mxu0 %v271_v63 }
  0xe2   :  { %1075 = vmatpush3.msra.mxu1 %v303_v0  ;;  %1041 = vmatprep.subr.mxu0 %v286_v1 }
  0xe3   :  { %1076 = vmatprep.subr.mxu1 %v318_v2  ;;  %1042 = vmatpush3.msra.mxu0 %v270_v3 }
  0xe4   :  { %1077 = vmatpush3.msra.mxu1 %v302_v5  ;;  %1043 = vmatprep.subr.mxu0 %v285_v6  ;;  %v880_v5 = vld [vmem:[%s1418_s4] ss:$0 sm:$0xff] }
  0xe5   :  { %1078 = vmatprep.subr.mxu1 %v317_v7  ;;  %1044 = vmatpush3.msra.mxu0 %v269_v10 }
  0xe6   :  { %1079 = vmatpush3.msra.mxu1 %v301_v11  ;;  %1045 = vmatprep.subr.mxu0 %v284_v13 }
  0xe7   :  { %1080 = vmatprep.subr.mxu1 %v316_v17  ;;  %1046 = vmatpush3.msra.mxu0 %v268_v20 }
  0xe8   :  { %1081 = vmatpush3.msra.mxu1 %v300_v21  ;;  %1047 = vmatprep.subr.mxu0 %v283_v22 }
  0xe9   :  { %876 = vmatprep.mubr.msk.f32.mxu0 %vm131_vm12, %v1268_v19  ;;  %1082 = vmatprep.subr.mxu1 %v315_v23 }
  0xea   :  { %878 = vmatprep.mubr.msk.f32.mxu1 %vm133_vm13, %v1268_v19  ;;  %1048 = vmatpush3.msra.mxu0 %v267_v24 }
  0xeb   :  { %1083 = vmatpush3.msra.mxu1 %v299_v25  ;;  %1049 = vmatprep.subr.mxu0 %v282_v26 }
  0xec   :  { %1084 = vmatprep.subr.mxu1 %v314_v16  ;;  %1050 = vmatpush3.msra.mxu0 %v266_v27 }
  0xed   :  { %1085 = vmatpush3.msra.mxu1 %v298_v12  ;;  %1051 = vmatprep.subr.mxu0 %v281_v28 }
  0xee   :  { %1086 = vmatprep.subr.mxu1 %v313_v29  ;;  %1052 = vmatpush3.msra.mxu0 %v265_v30 }
  0xef   :  { %1087 = vmatpush3.msra.mxu1 %v297_v14  ;;  %877 = vmatmul.mubr.msk.f32.vlgmr.msra.gmra.mxu0 %vm115_vm2, %v1268_v19 }
  0xf0   :  { %879 = vmatmul.mubr.msk.f32.vlgmr.msra.gmra.mxu1 %vm132_vm3, %v1268_v19  ;;  %1108 = vmatprep.subr.mxu0 %v1269_v8  ;;  %v765_v19 = vld [vmem:[#allocation7 + $0x40] sm:$0xff] }
  0xf1   :  { %1109 = vmatpush3.msra.mxu0 %v772_v18  ;;  %1140 = vmatprep.mubr.msk.f32.mxu0 %vm1270_vm4, %v1269_v8 }
  0xf2   :  { %1110 = vmatprep.subr.mxu0 %v1269_v8 }
  0xf3   :  { %1111 = vmatpush3.msra.mxu0 %v771_v9 }
  0xf4   :  { %1112 = vmatprep.subr.mxu0 %v1269_v8 }
  0xf5   :  { %1113 = vmatpush3.msra.mxu0 %v770_v15 }
  0xf6   :  { %1114 = vmatprep.subr.mxu0 %v1269_v8 }
  0xf7   :  { %1115 = vmatpush3.msra.mxu0 %v769_v31 }
  0xf8   :  { %1116 = vmatprep.subr.mxu0 %v1269_v8 }
  0xf9   :  { %1117 = vmatpush3.msra.mxu0 %v768_v32 }
  0xfa   :  { %1118 = vmatprep.subr.mxu0 %v1269_v8 }
  0xfb   :  { %1119 = vmatpush3.msra.mxu0 %v767_v33 }
  0xfc   :  { %1120 = vmatprep.subr.mxu0 %v1269_v8 }
  0xfd   :  { %1121 = vmatpush3.msra.mxu0 %v766_v34 }
  0xfe   :  { %1122 = vmatprep.subr.mxu0 %v1269_v8 }
  0xff   :  { %1123 = vmatpush3.msra.mxu0 %v765_v19 }
 0x100   :  { %1124 = vmatprep.subr.mxu0 %v1269_v8 }
 0x101   :  { %1125 = vmatpush3.msra.mxu0 %v764_v35 }
 0x102   :  { %1126 = vmatprep.subr.mxu0 %v1269_v8 }
 0x103   :  { %1127 = vmatpush3.msra.mxu0 %v763_v36 }
 0x104   :  { %1128 = vmatprep.subr.mxu0 %v1269_v8 }
 0x105   :  { %1129 = vmatpush3.msra.mxu0 %v762_v37 }
 0x106   :  { %1130 = vmatprep.subr.mxu0 %v1269_v8 }
 0x107   :  { %1131 = vmatpush3.msra.mxu0 %v761_v38 }
 0x108   :  { %1132 = vmatprep.subr.mxu0 %v1269_v8 }
 0x109   :  { %1133 = vmatpush3.msra.mxu0 %v760_v39 }
 0x10a   :  { %1134 = vmatprep.subr.mxu0 %v1269_v8 }
 0x10b   :  { %1135 = vmatpush3.msra.mxu0 %v759_v40 }
 0x10c   :  { %1136 = vmatprep.subr.mxu0 %v1269_v8 }
 0x10d   :  { %1137 = vmatpush3.msra.mxu0 %v758_v41 }
 0x10e   :  { %1138 = vmatprep.subr.mxu0 %v1269_v8 }
 0x10f   :  { %1139 = vmatpush3.msra.mxu0 %v757_v42 }
 0x16c   :  { %v913_v43 = vpop.f32.mrf.mxu0 }
 0x16d   :  { %v948_v45 = vpop.f32.mrf.mxu1 }
 0x16e   :  { %v914_v44 = vpop.f32.mrf.mxu0 }
 0x16f   :  { %v915_v47 = vadd.f32 %v914_v44, %v913_v43  ;;  %v949_v49 = vpop.f32.mrf.mxu1 }
 0x170   :  { %v950_v53 = vadd.f32 %v949_v49, %v948_v45 }
 0x171   :  { %v403_v51 = vadd.f32 %v915_v47, %v867_v48 }
 0x173   :  { %v473_v55 = vadd.f32 %v950_v53, %v403_v51 }
 0x18d   :  { %v983_v46 = vpop.f32.mrf.mxu0 }
 0x18e   :  { %v1018_v52 = vpop.f32.mrf.mxu1 }
 0x18f   :  { %v984_v50 = vpop.f32.mrf.mxu0 }
 0x190   :  { %v985_v54 = vadd.f32 %v984_v50, %v983_v46  ;;  %v1019_v56 = vpop.f32.mrf.mxu1 }
 0x191   :  { %v1020_v59 = vadd.f32 %v1019_v56, %v1018_v52 }
 0x192   :  { %v543_v57 = vadd.f32 %v985_v54, %v473_v55 }
 0x194   :  { %v613_v62 = vadd.f32 %v1020_v59, %v543_v57 }
 0x1af   :  { %v1053_v58 = vpop.f32.mrf.mxu0 }
 0x1b0   :  { %v1088_v60 = vpop.f32.mrf.mxu1 }
 0x1b1   :  { %v1054_v61 = vpop.f32.mrf.mxu0 }
 0x1b2   :  { %v1055_v63 = vadd.f32 %v1054_v61, %v1053_v58  ;;  %v1089_v0 = vpop.f32.mrf.mxu1 }
 0x1b3   :  { %v1090_v2 = vadd.f32 %v1089_v0, %v1088_v60 }
 0x1b4   :  { %v683_v1 = vadd.f32 %v1055_v63, %v613_v62 }
 0x1b6   :  { %v753_v3 = vadd.f32 %v1090_v2, %v683_v1 }
 0x1b8   :  { %v756_v4 = vmax.f32 %v753_v3, 0.0 }
 0x1ba   :  { %1141 = vmatmul.mubr.f32.vlgmr.msra.gmra.mxu0 %v756_v4 }
 0x27a   :  { %v846_v6 = vpop.f32.mrf.mxu0 }
 0x27b   :  { %v847_v7 = vadd.f32 %v880_v5, %v846_v6 }
 0x27c   :  { %v1142_v10 = vpop.f32.mrf.mxu0 }
 0x27d   :  { %850 = vst [vmem:[#allocation8] sm:$0xff] %v847_v7 }
 0x27e   :  { %1240 = shalt.err (!%p1237_p5)
}
 0x27f   :  { %860 = dma.vmem_to_hbm [thread:$0]  %s858_s11, 128, %s1419_s5, [#allocation4]  }
 0x280   :  { %1253 = dma.done.wait [#allocation4], 128  }
 0x281   :  { %1254 = vsyncadd [#allocation4], 4294967168 }
 0x282   :  { %864 = vsyncpa [#allocation3], 1 }
 0x283   :  { %865 = vsyncpa [#allocation6], 1 }
 0x284   :  { %866 = vsyncpa [#allocation4], 1 }

</bundles_post_ra>
